<compile_context>
chip_gen: v7x
topology: tpu7x:2x2x1
jax: 0.10.0
libtpu: 0.0.40
codegen_flags: <defaults>
</compile_context>

<pallas_src>
import functools

import jax
import jax.numpy as jnp
from jax.experimental import pallas as pl
from jax.experimental.pallas import tpu as pltpu


def two_tower_kernel(ue_ref, ae_ref, w1_ref, b1_ref, w2_ref, b2_ref, out_ref):
    """One batch (lane) tile; both towers packed into one matmul chain.

    ue_ref : [E, TB]   compute dtype  user-embedding tile (feature-major)
    ae_ref : [E, TB]   compute dtype  anime-embedding tile (feature-major)
    w1_ref : [2H, 2E]  compute dtype  block-diag layer-1 weights (transposed)
    b1_ref : [2H, 1]   f32
    w2_ref : [2H, 2H]  compute dtype  block-diag layer-2 weights (transposed)
    b2_ref : [2H, 1]   f32
    out_ref: [1, TB]   f32            per-example similarity scores (lane-dense)
    """
    # Concat the two towers along features (sublanes): [2E, TB].
    x = jnp.concatenate([ue_ref[...], ae_ref[...]], axis=0)

    # Layer 1 (both towers at once): [2H, 2E] @ [2E, TB] -> [2H, TB] f32 acc.
    h = jnp.dot(w1_ref[...], x, preferred_element_type=jnp.float32)
    h = jnp.maximum(h + b1_ref[...], 0.0)

    # Layer 2: [2H, 2H] @ [2H, TB] -> [2H, TB] (bf16 operands, f32 acc).
    o = jnp.dot(w2_ref[...], h.astype(x.dtype),
                preferred_element_type=jnp.float32)
    o = jnp.maximum(o + b2_ref[...], 0.0)

    # Split back into user / anime tower outputs; product-sum over features.
    hh = o.shape[0] // 2
    prod = o[:hh, :] * o[hh:, :]                          # [H, TB] f32
    out_ref[...] = jnp.sum(prod, axis=0, keepdims=True)   # [1, TB] lane-dense


def _round_up(x, m):
    return (x + m - 1) // m * m


def _cdiv(a, b):
    return (a + b - 1) // b


def _block_diag(a, b):
    m, n = a.shape
    p, q = b.shape
    top = jnp.concatenate([a, jnp.zeros((m, q), a.dtype)], axis=1)
    bot = jnp.concatenate([jnp.zeros((p, n), b.dtype), b], axis=1)
    return jnp.concatenate([top, bot], axis=0)


def prepare_packed_params(params, compute_dtype=jnp.bfloat16):
    """One-time packing (analogous to model-load time):
      * embedding tables stored pre-transposed [E, N] and in compute dtype, so
        the XLA gather produces kernel-layout activations with no extra copies;
      * block-diagonal transposed tower weights (2 MXU matmuls instead of 4).
    """
    c = compute_dtype
    f32 = jnp.float32
    return {
        "u_tab_t": params["user_emb"].T.astype(c),    # [E, num_users]
        "a_tab_t": params["anime_emb"].T.astype(c),   # [E, num_animes]
        "w1_t": _block_diag(params["u_w1"].T, params["a_w1"].T).astype(c),  # [2H, 2E]
        "w2_t": _block_diag(params["u_w2"].T, params["a_w2"].T).astype(c),  # [2H, 2H]
        "b1": jnp.concatenate([params["u_b1"], params["a_b1"]], axis=1).T.astype(f32),  # [2H,1]
        "b2": jnp.concatenate([params["u_b2"], params["a_b2"]], axis=1).T.astype(f32),  # [2H,1]
    }


@functools.partial(jax.jit, static_argnames=("max_batch_tile",))
def two_tower_forward(user_ids, anime_ids, packed, *, max_batch_tile=2048):
    """Forward pass matching TwoTowerNNModel: returns [B] similarity scores."""
    f32 = jnp.float32
    B = user_ids.shape[0]
    E = packed["u_tab_t"].shape[0]
    two_h, two_e = packed["w1_t"].shape
    assert two_e == 2 * E

    # --- batch (lane) tiling -------------------------------------------------
    max_bt = max(128, _round_up(max_batch_tile, 128))   # guard: multiple of 128
    b128 = _round_up(B, 128)
    if b128 <= max_bt and b128 >= 256:
        # Batch fits one big tile: split in two anyway so the "parallel" grid
        # axis has >= 2 tiles to shard across v7x's two TensorCores.
        tb = _round_up(_cdiv(B, 2), 128)
    else:
        tb = min(max_bt, b128)
    bp = _round_up(B, tb)
    num_tiles = bp // tb

    # --- embedding lookup (XLA gather), already in kernel layout -------------
    # Pad the ids (4 B/example) instead of the gathered activations, so the
    # gather output [E, bp] (compute dtype) IS the kernel input: no concat,
    # transpose, pad or cast copies remain on the host side.
    uid = jnp.pad(user_ids.astype(jnp.int32), (0, bp - B))
    aid = jnp.pad(anime_ids.astype(jnp.int32), (0, bp - B))
    ue_t = jnp.take(packed["u_tab_t"], uid, axis=1)   # [E, bp]
    ae_t = jnp.take(packed["a_tab_t"], aid, axis=1)   # [E, bp]

    itemsize = jnp.dtype(ue_t.dtype).itemsize
    cost = pl.CostEstimate(
        flops=2 * bp * (two_e * two_h + two_h * two_h),
        transcendentals=0,
        bytes_accessed=((ue_t.size + ae_t.size
                         + packed["w1_t"].size + packed["w2_t"].size) * itemsize
                        + (packed["b1"].size + packed["b2"].size) * 4
                        + bp * 4),
    )

    out = pl.pallas_call(
        two_tower_kernel,
        out_shape=jax.ShapeDtypeStruct((1, bp), f32),
        grid=(num_tiles,),
        in_specs=[
            # Embedding tiles: tiled along the batch/lane axis (auto double-buffered).
            pl.BlockSpec((E, tb), lambda i: (0, i)),
            pl.BlockSpec((E, tb), lambda i: (0, i)),
            # Weights / biases: constant block index -> resident in VMEM.
            pl.BlockSpec((two_h, two_e), lambda i: (0, 0)),
            pl.BlockSpec((two_h, 1), lambda i: (0, 0)),
            pl.BlockSpec((two_h, two_h), lambda i: (0, 0)),
            pl.BlockSpec((two_h, 1), lambda i: (0, 0)),
        ],
        out_specs=pl.BlockSpec((1, tb), lambda i: (0, i)),
        compiler_params=pltpu.CompilerParams(
            dimension_semantics=("parallel",),   # megacore sharding on v7x
            vmem_limit_bytes=32 * 1024 * 1024,
        ),
        cost_estimate=cost,
    )(ue_t, ae_t, packed["w1_t"], packed["b1"], packed["w2_t"], packed["b2"])

    return out[0, :B]   # [B], matching (user_output * anime_output).sum(dim=1)


def init_params(key, num_users, num_animes, embedding_dim, hidden_dim):
    ks = jax.random.split(key, 10)
    f32 = jnp.float32
    # Linear weights stored already transposed to [in, out] (x @ W + b form).
    return {
        "user_emb": jax.random.normal(ks[0], (num_users, embedding_dim), f32),
        "anime_emb": jax.random.normal(ks[1], (num_animes, embedding_dim), f32),
        "u_w1": jax.random.normal(ks[2], (embedding_dim, hidden_dim), f32) * 0.1,
        "u_b1": jax.random.normal(ks[3], (1, hidden_dim), f32) * 0.1,
        "u_w2": jax.random.normal(ks[4], (hidden_dim, hidden_dim), f32) * 0.1,
        "u_b2": jax.random.normal(ks[5], (1, hidden_dim), f32) * 0.1,
        "a_w1": jax.random.normal(ks[6], (embedding_dim, hidden_dim), f32) * 0.1,
        "a_b1": jax.random.normal(ks[7], (1, hidden_dim), f32) * 0.1,
        "a_w2": jax.random.normal(ks[8], (hidden_dim, hidden_dim), f32) * 0.1,
        "a_b2": jax.random.normal(ks[9], (1, hidden_dim), f32) * 0.1,
    }


def reference_forward(user_ids, anime_ids, params, compute_dtype=jnp.bfloat16):
    """Pure-JAX reference matching the PyTorch forward, mirroring the kernel's
    numerics (bf16 tables / MXU operands, f32 accumulation and elementwise)."""
    f32 = jnp.float32
    c = compute_dtype

    def tower(x, w1, b1, w2, b2):
        h = jnp.dot(x, w1.astype(c), preferred_element_type=f32)
        h = jnp.maximum(h + b1, 0.0)
        o = jnp.dot(h.astype(c), w2.astype(c), preferred_element_type=f32)
        return jnp.maximum(o + b2, 0.0)

    ue = jnp.take(params["user_emb"].astype(c), user_ids, axis=0)
    ae = jnp.take(params["anime_emb"].astype(c), anime_ids, axis=0)
    uo = tower(ue, params["u_w1"], params["u_b1"], params["u_w2"], params["u_b2"])
    ao = tower(ae, params["a_w1"], params["a_b1"], params["a_w2"], params["a_b2"])
    return jnp.sum(uo * ao, axis=1)


if __name__ == "__main__":
    key = jax.random.PRNGKey(0)

    num_users, num_animes = 64, 128
    embedding_dim, hidden_dim = 32, 32
    batch = 8

    pkey, ukey, akey = jax.random.split(key, 3)
    params = init_params(pkey, num_users, num_animes, embedding_dim, hidden_dim)
    packed = prepare_packed_params(params)
    user_ids = jax.random.randint(ukey, (batch,), 0, num_users, dtype=jnp.int32)
    anime_ids = jax.random.randint(akey, (batch,), 0, num_animes, dtype=jnp.int32)

    scores = two_tower_forward(user_ids, anime_ids, packed)
    scores = jax.block_until_ready(scores)

    ref = reference_forward(user_ids, anime_ids, params)
    assert scores.shape == (batch,)
    assert jnp.allclose(scores, ref, atol=1e-3, rtol=1e-3), (scores, ref)

    print("KERNEL_OK")
</pallas_src>

<mosaic_0001>
module attributes {stable_mosaic.version = 11 : i64} {
  func.func @two_tower_kernel(%arg0: i32, %arg1: memref<32x128xbf16, #tpu.memory_space<vmem>>, %arg2: memref<32x128xbf16, #tpu.memory_space<vmem>>, %arg3: memref<64x64xbf16, #tpu.memory_space<vmem>>, %arg4: memref<64x1xf32, #tpu.memory_space<vmem>>, %arg5: memref<64x64xbf16, #tpu.memory_space<vmem>>, %arg6: memref<64x1xf32, #tpu.memory_space<vmem>>, %arg7: memref<1x128xf32, #tpu.memory_space<vmem>>) attributes {dimension_semantics = [#tpu.dimension_semantics<parallel>], iteration_bounds = array<i64: 1>, scalar_prefetch = 0 : i64, scratch_operands = 0 : i64, tpu.core_type = #tpu.core_type<tc>, window_params = [{transform_indices = @transform_0, window_bounds = array<i64: 32, 128>}, {transform_indices = @transform_1, window_bounds = array<i64: 32, 128>}, {pipeline_mode = #tpu.pipeline_mode<synchronous>, transform_indices = @transform_2, window_bounds = array<i64: 64, 64>}, {pipeline_mode = #tpu.pipeline_mode<synchronous>, transform_indices = @transform_3, window_bounds = array<i64: 64, 1>}, {pipeline_mode = #tpu.pipeline_mode<synchronous>, transform_indices = @transform_4, window_bounds = array<i64: 64, 64>}, {pipeline_mode = #tpu.pipeline_mode<synchronous>, transform_indices = @transform_5, window_bounds = array<i64: 64, 1>}, {transform_indices = @transform_6, window_bounds = array<i64: 1, 128>}]} {
    %c0 = arith.constant 0 : index
    %c0_0 = arith.constant 0 : index
    %0 = vector.load %arg1[%c0, %c0_0] : memref<32x128xbf16, #tpu.memory_space<vmem>>, vector<32x128xbf16>
    %c0_1 = arith.constant 0 : index
    %c0_2 = arith.constant 0 : index
    %1 = vector.load %arg2[%c0_1, %c0_2] : memref<32x128xbf16, #tpu.memory_space<vmem>>, vector<32x128xbf16>
    %2 = tpu.concatenate %0, %1 in 0 : vector<32x128xbf16>, vector<32x128xbf16> -> vector<64x128xbf16>
    %c0_3 = arith.constant 0 : index
    %c0_4 = arith.constant 0 : index
    %3 = vector.load %arg3[%c0_3, %c0_4] : memref<64x64xbf16, #tpu.memory_space<vmem>>, vector<64x64xbf16>
    %cst = arith.constant dense<0.000000e+00> : vector<64x128xf32>
    %4 = tpu.matmul %3, %2, %cst {dimension_numbers = #tpu.dot_dimension_numbers<[1], [0], [0], [1], [0, 0, 1, 1], [], []>} : vector<64x64xbf16>, vector<64x128xbf16>, vector<64x128xf32> -> vector<64x128xf32>
    %c0_5 = arith.constant 0 : index
    %c0_6 = arith.constant 0 : index
    %5 = vector.load %arg4[%c0_5, %c0_6] : memref<64x1xf32, #tpu.memory_space<vmem>>, vector<64x1xf32>
    %6 = vector.broadcast %5 : vector<64x1xf32> to vector<64x128xf32>
    %7 = arith.addf %4, %6 : vector<64x128xf32>
    %cst_7 = arith.constant 0.000000e+00 : f32
    %8 = vector.broadcast %cst_7 : f32 to vector<64x128xf32>
    %9 = arith.maximumf %7, %8 : vector<64x128xf32>
    %c0_8 = arith.constant 0 : index
    %c0_9 = arith.constant 0 : index
    %10 = vector.load %arg5[%c0_8, %c0_9] : memref<64x64xbf16, #tpu.memory_space<vmem>>, vector<64x64xbf16>
    %11 = arith.truncf %9 : vector<64x128xf32> to vector<64x128xbf16>
    %cst_10 = arith.constant dense<0.000000e+00> : vector<64x128xf32>
    %12 = tpu.matmul %10, %11, %cst_10 {dimension_numbers = #tpu.dot_dimension_numbers<[1], [0], [0], [1], [0, 0, 1, 1], [], []>} : vector<64x64xbf16>, vector<64x128xbf16>, vector<64x128xf32> -> vector<64x128xf32>
    %c0_11 = arith.constant 0 : index
    %c0_12 = arith.constant 0 : index
    %13 = vector.load %arg6[%c0_11, %c0_12] : memref<64x1xf32, #tpu.memory_space<vmem>>, vector<64x1xf32>
    %14 = vector.broadcast %13 : vector<64x1xf32> to vector<64x128xf32>
    %15 = arith.addf %12, %14 : vector<64x128xf32>
    %cst_13 = arith.constant 0.000000e+00 : f32
    %16 = vector.broadcast %cst_13 : f32 to vector<64x128xf32>
    %17 = arith.maximumf %15, %16 : vector<64x128xf32>
    %18 = vector.extract_strided_slice %17 {offsets = [0, 0], sizes = [32, 128], strides = [1, 1]} : vector<64x128xf32> to vector<32x128xf32>
    %19 = vector.extract_strided_slice %17 {offsets = [32, 0], sizes = [32, 128], strides = [1, 1]} : vector<64x128xf32> to vector<32x128xf32>
    %20 = arith.mulf %18, %19 : vector<32x128xf32>
    %cst_14 = arith.constant dense<0.000000e+00> : vector<128xf32>
    %21 = vector.multi_reduction <add>, %20, %cst_14 [0] : vector<32x128xf32> to vector<128xf32>
    %22 = vector.shape_cast %21 : vector<128xf32> to vector<1x128xf32>
    %c0_15 = arith.constant 0 : index
    %c0_16 = arith.constant 0 : index
    %23 = vector.load %arg7[%c0_15, %c0_16] : memref<1x128xf32, #tpu.memory_space<vmem>>, vector<1x128xf32>
    tpu.vector_store %arg7[%c0_15, %c0_16], %22 {strides = array<i32>} : memref<1x128xf32, #tpu.memory_space<vmem>>, vector<1x128xf32>,
    return
  }
  func.func @transform_0(%arg0: i32) -> (i32, i32) {
    %c0_i32 = arith.constant 0 : i32
    %c0_i32_0 = arith.constant 0 : i32
    return %c0_i32, %arg0 : i32, i32
  }
  func.func @transform_1(%arg0: i32) -> (i32, i32) {
    %c0_i32 = arith.constant 0 : i32
    %c0_i32_0 = arith.constant 0 : i32
    return %c0_i32, %arg0 : i32, i32
  }
  func.func @transform_2(%arg0: i32) -> (i32, i32) {
    %c0_i32 = arith.constant 0 : i32
    %c0_i32_0 = arith.constant 0 : i32
    %c0_i32_1 = arith.constant 0 : i32
    return %c0_i32, %c0_i32_0 : i32, i32
  }
  func.func @transform_3(%arg0: i32) -> (i32, i32) {
    %c0_i32 = arith.constant 0 : i32
    %c0_i32_0 = arith.constant 0 : i32
    %c0_i32_1 = arith.constant 0 : i32
    return %c0_i32, %c0_i32_0 : i32, i32
  }
  func.func @transform_4(%arg0: i32) -> (i32, i32) {
    %c0_i32 = arith.constant 0 : i32
    %c0_i32_0 = arith.constant 0 : i32
    %c0_i32_1 = arith.constant 0 : i32
    return %c0_i32, %c0_i32_0 : i32, i32
  }
  func.func @transform_5(%arg0: i32) -> (i32, i32) {
    %c0_i32 = arith.constant 0 : i32
    %c0_i32_0 = arith.constant 0 : i32
    %c0_i32_1 = arith.constant 0 : i32
    return %c0_i32, %c0_i32_0 : i32, i32
  }
  func.func @transform_6(%arg0: i32) -> (i32, i32) {
    %c0_i32 = arith.constant 0 : i32
    %c0_i32_0 = arith.constant 0 : i32
    return %c0_i32, %arg0 : i32, i32
  }
}

</mosaic_0001>

<bundles_post_ra>
// kernel: two_tower_forward.1
= control target key start
LH: loop header
LB: loop body
LE: loop exit
PB: predicated region body
PF: predicated region fallthrough
CT: control target
= control target key end

     0   :  { %v484_v1 = vmov 0   ;;  %vm132_vm0 = vcmask 523264   ;;  %s615_s0 = inlined_call_operand.vmem [shape: bf16[32,128], index: 0, kind: input, shape index: {}]   ;;  %s616_s1 = inlined_call_operand.vmem [shape: bf16[32,128], index: 1, kind: input, shape index: {}]   ;;  %s617_s2 = inlined_call_operand.vmem [shape: bf16[64,64], index: 2, kind: input, shape index: {}]   ;;  %s618_s3 = inlined_call_operand.vmem [shape: f32[64,1], index: 3, kind: input, shape index: {}]   ;;  %s619_s5 = inlined_call_operand.vmem [shape: f32[64,1], index: 5, kind: input, shape index: {}]   ;;  %s620_s4 = inlined_call_operand.vmem [shape: bf16[64,64], index: 4, kind: input, shape index: {}]   ;;  %s621_s6 = inlined_call_operand.vmem [shape: f32[1,128], index: 6, kind: output, shape index: {}]  }
   0x1   :  { %v472_v0 = vld [vmem:[%s615_s0] sm:$0xff]   ;;  %470 = vset.pattern.permute.xlu0 %v484_v1  ;;  %471 = vset.pattern.permute.xlu1 %v484_v1  ;;  %v473_v2 = vld [vmem:[%s615_s0 + $0x8] sm:$0xff]   ;;  %v66_v7 = vld [vmem:[%s618_s3 + $0x10] sm:$0xff] }
   0x2   :  { %437 = vmatprep.subr.bf16.mxu0 %v472_v0  ;;  %v474_v3 = vld [vmem:[%s616_s1] sm:$0xff]   ;;  %v475_v5 = vld [vmem:[%s616_s1 + $0x8] sm:$0xff]   ;;  %84 = vperm.xlu1 %471, %v66_v7   ;;  %v67_v9 = vld [vmem:[%s618_s3 + $0x18] sm:$0xff] }
   0x3   :  { %438 = vmatpush3.bf16.msra.mxu0 %v472_v0  ;;  %v476_v4 = vld [vmem:[%s617_s2] sm:$0xff]   ;;  %v65_v8 = vld [vmem:[%s618_s3 + $0x8] sm:$0xff]  ;;  %v478_v13 = vld [vmem:[%s617_s2 + $0x10] sm:$0xff]  }
   0x4   :  { %439 = vmatprep.subr.bf16.mxu0 %v473_v2  ;;  %445 = vmatprep.mubr.msk.bf16.mxu0 %vm132_vm0, %v476_v4  ;;  %v64_v6 = vld [vmem:[%s618_s3] sm:$0xff]  ;;  %v477_v10 = vld [vmem:[%s617_s2 + $0x8] sm:$0xff]   ;;  %v70_v14 = vld [vmem:[%s618_s3 + $0x30] sm:$0xff] }
   0x5   :  { %74 = vperm.xlu0 %470, %v64_v6   ;;  %v68_v11 = vld [vmem:[%s618_s3 + $0x20] sm:$0xff]  ;;  %v69_v12 = vld [vmem:[%s618_s3 + $0x28] sm:$0xff]  ;;  %v71_v15 = vld [vmem:[%s618_s3 + $0x38] sm:$0xff] }
   0x6   :  { %89 = vperm.xlu1 %471, %v67_v9   ;;  %v479_v16 = vld [vmem:[%s617_s2 + $0x18] sm:$0xff]   ;;  %v230_v17 = vld [vmem:[%s619_s5] sm:$0xff]  ;;  %v231_v18 = vld [vmem:[%s619_s5 + $0x8] sm:$0xff] }
   0x7   :  { %440 = vmatpush3.bf16.msra.mxu0 %v473_v2  ;;  %v234_v19 = vld [vmem:[%s619_s5 + $0x20] sm:$0xff]  ;;  %v235_v20 = vld [vmem:[%s619_s5 + $0x28] sm:$0xff]  ;;  %v232_v21 = vld [vmem:[%s619_s5 + $0x10] sm:$0xff] }
   0x8   :  { %441 = vmatprep.subr.bf16.mxu0 %v474_v3  ;;  %v236_v22 = vld [vmem:[%s619_s5 + $0x30] sm:$0xff]  ;;  %v233_v23 = vld [vmem:[%s619_s5 + $0x18] sm:$0xff]  ;;  %v480_v25 = vld [vmem:[%s620_s4] sm:$0xff]  }
   0x9   :  { %79 = vperm.xlu0 %470, %v65_v8   ;;  %v237_v24 = vld [vmem:[%s619_s5 + $0x38] sm:$0xff]  ;;  %461 = vmatprep.mubr.msk.bf16.mxu1 %vm132_vm0, %v480_v25  ;;  %v481_v62 = vld [vmem:[%s620_s4 + $0x8] sm:$0xff]   ;;  %v482_v63 = vld [vmem:[%s620_s4 + $0x10] sm:$0xff]  }
   0xa   :  { %99 = vperm.xlu1 %471, %v69_v12   ;;  %v483_v0 = vld [vmem:[%s620_s4 + $0x18] sm:$0xff]  }
   0xb   :  { %442 = vmatpush3.bf16.msra.mxu0 %v474_v3 }
   0xc   :  { %443 = vmatprep.subr.bf16.mxu0 %v475_v5 }
   0xd   :  { %94 = vperm.xlu0 %470, %v68_v11  }
   0xe   :  { %109 = vperm.xlu1 %471, %v71_v15  }
   0xf   :  { %444 = vmatpush3.bf16.msra.mxu0 %v475_v5 }
  0x11   :  { %104 = vperm.xlu0 %470, %v70_v14  }
  0x12   :  { %446 = vmatmul.mubr.msk.bf16.vlgmr.msra.gmra.mrb[0].mxu0 %vm132_vm0, %v477_v10  ;;  %245 = vperm.xlu1 %471, %v231_v18  }
  0x13   :  { %449 = vmatprep.mubr.msk.bf16.mxu0 %vm132_vm0, %v478_v13 }
  0x15   :  { %240 = vperm.xlu0 %470, %v230_v17  }
  0x16   :  { %265 = vperm.xlu1 %471, %v235_v20  }
  0x19   :  { %260 = vperm.xlu0 %470, %v234_v19  }
  0x1a   :  { %450 = vmatmul.mubr.msk.bf16.gmra.mrb[4].mxu0 %vm132_vm0, %v479_v16  ;;  %270 = vperm.xlu1 %471, %v236_v22  }
  0x1d   :  { %250 = vperm.xlu0 %470, %v232_v21  }
  0x1e   :  { %275 = vperm.xlu1 %471, %v237_v24  }
  0x21   :  { %255 = vperm.xlu0 %470, %v233_v23  }
  0x81   :  { %v85_v27 = vpop.permute.xlu1 %84 }
  0x84   :  { %v75_v26 = vpop.permute.xlu0 %74 }
  0x85   :  { %v90_v29 = vpop.permute.xlu1 %89 }
  0x88   :  { %v80_v28 = vpop.permute.xlu0 %79 }
  0x89   :  { %v100_v38 = vpop.permute.xlu1 %99 }
  0x8c   :  { %v95_v33 = vpop.permute.xlu0 %94 }
  0x8d   :  { %v110_v50 = vpop.permute.xlu1 %109 }
  0x90   :  { %v105_v45 = vpop.permute.xlu0 %104 }
  0x91   :  { %v246_v2 = vpop.permute.xlu1 %245 }
  0x94   :  { %v241_v1 = vpop.permute.xlu0 %240 }
  0x95   :  { %v266_v4 = vpop.permute.xlu1 %265 }
  0x98   :  { %v261_v3 = vpop.permute.xlu0 %260 }
  0x99   :  { %v271_v10 = vpop.permute.xlu1 %270 }
  0x9c   :  { %v251_v7 = vpop.permute.xlu0 %250 }
  0x9d   :  { %v276_v18 = vpop.permute.xlu1 %275 }
  0xa0   :  { %v256_v12 = vpop.permute.xlu0 %255 }
  0xe5   :  { %v447_v30 = vpop.f32.mrb[0].mxu0 }
  0xe6   :  { %v188_v31 = vadd.f32 %v447_v30, %v85_v27  ;;  %v179_v32 = vpop.f32.mrb[1].mxu0 }
  0xe7   :  { %v180_v34 = vadd.f32 %v179_v32, %v75_v26  ;;  %v448_v35 = vpop.f32.mrb[2].mxu0 }
  0xe8   :  { %v191_v36 = vadd.f32 %v448_v35, %v90_v29  ;;  %v182_v37 = vpop.f32.mrb[3].mxu0  ;;  %v212_v40 = vmax.f32 %v188_v31, 0.0 }
  0xe9   :  { %v183_v39 = vadd.f32 %v182_v37, %v80_v28  ;;  %v210_v42 = vmax.f32 %v180_v34, 0.0 }
  0xea   :  { %v213_v41 = vmax.f32 %v191_v36, 0.0 }
  0xeb   :  { %v211_v43 = vmax.f32 %v183_v39, 0.0 }
  0xec   :  { %v227_v44 = vpack.c.bf16 %v213_v41, %v212_v40 }
  0xed   :  { %v451_v46 = vpop.f32.mrb[4].mxu0  ;;  %v226_v47 = vpack.c.bf16 %v211_v43, %v210_v42 }
  0xee   :  { %v204_v48 = vadd.f32 %v451_v46, %v105_v45  ;;  %v195_v49 = vpop.f32.mrb[5].mxu0 }
  0xef   :  { %v196_v51 = vadd.f32 %v195_v49, %v95_v33  ;;  %v452_v52 = vpop.f32.mrb[6].mxu0  ;;  %453 = vmatprep.subr.bf16.mxu1 %v226_v47 }
  0xf0   :  { %v207_v53 = vadd.f32 %v452_v52, %v110_v50  ;;  %v198_v54 = vpop.f32.mrb[7].mxu0  ;;  %454 = vmatpush3.bf16.msra.mxu1 %v226_v47  ;;  %v216_v56 = vmax.f32 %v204_v48, 0.0 }
  0xf1   :  { %v199_v55 = vadd.f32 %v198_v54, %v100_v38  ;;  %455 = vmatprep.subr.bf16.mxu1 %v227_v44  ;;  %v214_v58 = vmax.f32 %v196_v51, 0.0 }
  0xf2   :  { %v217_v57 = vmax.f32 %v207_v53, 0.0 }
  0xf3   :  { %v215_v59 = vmax.f32 %v199_v55, 0.0 }
  0xf4   :  { %v229_v60 = vpack.c.bf16 %v217_v57, %v216_v56  ;;  %456 = vmatpush3.bf16.msra.mxu1 %v227_v44 }
  0xf5   :  { %v228_v61 = vpack.c.bf16 %v215_v59, %v214_v58 }
  0xf7   :  { %457 = vmatprep.subr.bf16.mxu1 %v228_v61 }
  0xf8   :  { %458 = vmatpush3.bf16.msra.mxu1 %v228_v61 }
  0xf9   :  { %459 = vmatprep.subr.bf16.mxu1 %v229_v60 }
  0xfc   :  { %460 = vmatpush3.bf16.msra.mxu1 %v229_v60 }
  0xff   :  { %462 = vmatmul.mubr.msk.bf16.vlgmr.msra.gmra.mrb[0].mxu1 %vm132_vm0, %v481_v62 }
 0x100   :  { %465 = vmatprep.mubr.msk.bf16.mxu1 %vm132_vm0, %v482_v63 }
 0x107   :  { %466 = vmatmul.mubr.msk.bf16.gmra.mrb[4].mxu1 %vm132_vm0, %v483_v0 }
 0x1d2   :  { %v463_v5 = vpop.f32.mrb[0].mxu1 }
 0x1d3   :  { %v344_v6 = vpop.f32.mrb[1].mxu1  ;;  %v353_v11 = vadd.f32 %v463_v5, %v251_v7 }
 0x1d4   :  { %v464_v8 = vpop.f32.mrb[2].mxu1  ;;  %v345_v13 = vadd.f32 %v344_v6, %v241_v1 }
 0x1d5   :  { %v347_v9 = vpop.f32.mrb[3].mxu1  ;;  %v356_v15 = vadd.f32 %v464_v8, %v256_v12  ;;  %v377_v22 = vmax.f32 %v353_v11, 0.0 }
 0x1d6   :  { %v348_v19 = vadd.f32 %v347_v9, %v246_v2  ;;  %v375_v26 = vmax.f32 %v345_v13, 0.0 }
 0x1d7   :  { %v378_v29 = vmax.f32 %v356_v15, 0.0 }
 0x1d8   :  { %v376_v32 = vmax.f32 %v348_v19, 0.0 }
 0x1da   :  { %v467_v14 = vpop.f32.mrb[4].mxu1 }
 0x1db   :  { %v369_v16 = vadd.f32 %v467_v14, %v271_v10  ;;  %v360_v17 = vpop.f32.mrb[5].mxu1 }
 0x1dc   :  { %v361_v20 = vadd.f32 %v360_v17, %v261_v3  ;;  %v468_v21 = vpop.f32.mrb[6].mxu1 }
 0x1dd   :  { %v381_v23 = vmax.f32 %v369_v16, 0.0  ;;  %v372_v24 = vadd.f32 %v468_v21, %v276_v18  ;;  %v363_v25 = vpop.f32.mrb[7].mxu1 }
 0x1de   :  { %v379_v27 = vmax.f32 %v361_v20, 0.0  ;;  %v364_v28 = vadd.f32 %v363_v25, %v266_v4 }
 0x1df   :  { %v385_v30 = vmul.f32 %v381_v23, %v377_v22  ;;  %v382_v31 = vmax.f32 %v372_v24, 0.0 }
 0x1e0   :  { %v383_v33 = vmul.f32 %v379_v27, %v375_v26  ;;  %v380_v34 = vmax.f32 %v364_v28, 0.0 }
 0x1e1   :  { %v386_v35 = vmul.f32 %v382_v31, %v378_v29 }
 0x1e2   :  { %v384_v36 = vmul.f32 %v380_v34, %v376_v32 }
 0x1e4   :  { %v387_v37 = vadd.f32 %v384_v36, %v383_v33 }
 0x1e6   :  { %v388_v38 = vadd.f32 %v387_v37, %v385_v30 }
 0x1e8   :  { %v389_v39 = vadd.f32 %v388_v38, %v386_v35 }
 0x1ea   :  { %v390_v40 = vrot.slane %v389_v39, 4 }
 0x1ec   :  { %v391_v41 = vadd.f32 %v390_v40, %v389_v39 }
 0x1ee   :  { %v392_v42 = vrot.slane %v391_v41, 2 }
 0x1f0   :  { %v393_v43 = vadd.f32 %v392_v42, %v391_v41 }
 0x1f2   :  { %v394_v44 = vrot.slane %v393_v43, 1 }
 0x1f4   :  { %v395_v45 = vadd.f32 %v394_v44, %v393_v43 }
 0x1f6   :  { %396 = vst [vmem:[%s621_s6] sm:$0x1] %v395_v45 }

</bundles_post_ra>
